<compile_context>
chip_gen: v6e
topology: v6e:2x2x1
jax: 0.10.0
libtpu: 0.0.40
codegen_flags: <defaults>
</compile_context>

<pallas_src>
import functools

import jax
import jax.numpy as jnp
from jax import lax
from jax.experimental import pallas as pl
from jax.experimental.pallas import tpu as pltpu


def _round_up(x, m):
    return ((x + m - 1) // m) * m


def _abs_pow(diff, beta):
    """|diff| ** beta, specialized to VPU multiplies for small integer beta."""
    if isinstance(beta, float) and float(beta).is_integer():
        beta = int(beta)
    if isinstance(beta, int) and not isinstance(beta, bool) and 0 <= beta <= 8:
        if beta == 0:
            return jnp.ones_like(diff)
        sq = diff * diff
        if beta % 2 == 0:
            res = sq
            for _ in range(beta // 2 - 1):
                res = res * sq
        else:
            res = jnp.abs(diff)
            for _ in range(beta // 2):
                res = res * sq
        return res
    # TODO(synk): non-integer / large beta falls back to pow (EUP exp+log path).
    return jnp.abs(diff) ** beta


def _heatmap_loss_kernel(pred_ref, gt_ref, tw_ref, out_ref, *, beta, tile_rows,
                         tiles_per_split, num_rows, num_cols, hw_pad):
    s = pl.program_id(0)   # split (parallel; maps to TensorCores on v7x)
    i = pl.program_id(1)   # row-tile within split (reduction axis)

    # The (1, 1, HW_pad) output block keeps the same block index across the
    # whole i axis, so it stays VMEM-resident and acts as the accumulator.
    @pl.when(i == 0)
    def _():
        out_ref[...] = jnp.zeros_like(out_ref)

    t = s * tiles_per_split + i          # global row-tile index (unclamped)
    row_start = t * tile_rows
    row_end = row_start + tile_rows
    lane_tail = hw_pad > num_cols        # static: spatial axis not 128-aligned

    def accumulate(row_mask_needed):
        pred = pred_ref[...].astype(jnp.float32)
        gt = gt_ref[...].astype(jnp.float32)
        tw = tw_ref[...].astype(jnp.float32)          # (tile_rows, 1)
        diff = pred - gt
        contrib = (_abs_pow(diff, beta) * tw) * (diff * diff)

        mask = None
        if lane_tail:
            lane_ids = lax.broadcasted_iota(jnp.int32, (tile_rows, hw_pad), 1)
            mask = lane_ids < num_cols
        if row_mask_needed:
            row_ids = row_start + lax.broadcasted_iota(
                jnp.int32, (tile_rows, hw_pad), 0)
            row_ok = row_ids < num_rows
            mask = row_ok if mask is None else jnp.logical_and(mask, row_ok)
        if mask is not None:
            # jnp.where selects, so garbage (even NaN/Inf) in the overhanging
            # rows/lanes (including garbage target_weight rows) contributes 0.
            contrib = jnp.where(mask, contrib, 0.0)

        out_ref[...] += jnp.sum(contrib, axis=0, keepdims=True).reshape(
            1, 1, hw_pad)

    # Interior tile: all rows valid -> mask-free fast path.
    @pl.when(row_end <= num_rows)
    def _():
        accumulate(False)

    # Row-tail tile: mask rows >= num_rows.
    @pl.when(jnp.logical_and(row_start < num_rows, row_end > num_rows))
    def _():
        accumulate(True)

    # Fully out-of-range (redundant split-padding) steps fall through: no add.


def _tpu_vmem_and_cores():
    """Best-effort per-TensorCore VMEM capacity and TensorCore count."""
    vmem_cap = 64 * 1024 * 1024   # conservative default (v7x per-TC VMEM)
    num_cores = 1
    try:
        info = pltpu.get_tpu_info()
        vmem_cap = int(getattr(info, "vmem_capacity_bytes", vmem_cap))
        for attr in ("num_cores", "core_count", "tensorcores_per_chip",
                     "num_tensorcores"):
            v = getattr(info, attr, None)
            if v:
                num_cores = int(v)
                break
    except Exception:
        pass
    return vmem_cap, num_cores


def heatmap_loss(output, target, target_weight, beta=1, num_splits=None,
                 vmem_budget_bytes=None):
    """output/target: (B, J, H, W); target_weight: (B, J, 1). Returns scalar
    mean of |pred-gt|**beta * target_weight * (pred-gt)**2 (torch HeatmapLoss)."""
    B, J, H, W = output.shape
    BJ, HW = B * J, H * W
    HW_pad = _round_up(HW, 128)

    pred = output.reshape(BJ, HW)
    gt = target.reshape(BJ, HW)
    tw = target_weight.reshape(BJ, 1)

    in_itemsize = jnp.dtype(output.dtype).itemsize
    # Sublane alignment: 8 for 4-byte, 16 for 2-byte (bf16), 32 for 1-byte.
    sub = 8 if in_itemsize >= 4 else (16 if in_itemsize == 2 else 32)

    vmem_cap, num_cores = _tpu_vmem_and_cores()
    if num_splits is None:
        # 2-way megacore split only on multi-TensorCore chips (v7x); v5e/v6e
        # have one TC so the split would only add padding/tail work.
        num_splits = 2 if num_cores >= 2 else 1
    num_splits = max(1, min(num_splits, BJ // sub if BJ >= sub else 1))

    # ---- tile sizing by bytes against per-chip VMEM ------------------------
    # Per row of a tile: 2 inputs x 2 pipeline buffers (input dtype) plus a
    # conservative ~4 f32-sized temporaries for the elementwise chain.  The
    # tiny tw / output blocks are covered by the headroom.
    if vmem_budget_bytes is None:
        vmem_budget_bytes = max(8 << 20, int(vmem_cap * 0.7) - (4 << 20))
    per_row_bytes = HW_pad * (4 * in_itemsize + 4 * 4)
    budget_rows = max(sub, (vmem_budget_bytes // per_row_bytes) // sub * sub)

    rows_per_split = pl.cdiv(BJ, num_splits)
    tile_rows = min(budget_rows, _round_up(rows_per_split, sub))
    tile_rows = max(sub, (tile_rows // sub) * sub)

    total_row_tiles = pl.cdiv(BJ, tile_rows)
    tiles_per_split = pl.cdiv(total_row_tiles, num_splits)
    last_tile = total_row_tiles - 1

    def row_block(s, i):
        # Clamp so redundant split-padding steps never index past the array;
        # the kernel skips their accumulation via the row_start >= BJ guard.
        return (jnp.minimum(s * tiles_per_split + i, last_tile), 0)

    kernel = functools.partial(
        _heatmap_loss_kernel, beta=beta, tile_rows=tile_rows,
        tiles_per_split=tiles_per_split, num_rows=BJ, num_cols=HW,
        hw_pad=HW_pad)

    tw_itemsize = jnp.dtype(target_weight.dtype).itemsize
    vmem_need = (4 * tile_rows * HW_pad * in_itemsize      # 2 inputs x 2 bufs
                 + 4 * tile_rows * HW_pad * 4              # f32 temporaries
                 + 2 * tile_rows * 128 * tw_itemsize       # tw blocks (lane-padded)
                 + 2 * HW_pad * 4)                         # output block
    vmem_limit = int(min(vmem_cap, max(32 << 20, vmem_need + (6 << 20))))

    partials = pl.pallas_call(
        kernel,
        out_shape=jax.ShapeDtypeStruct((num_splits, 1, HW_pad), jnp.float32),
        grid_spec=pltpu.PrefetchScalarGridSpec(
            num_scalar_prefetch=0,
            grid=(num_splits, tiles_per_split),
            in_specs=[
                pl.BlockSpec((tile_rows, HW_pad), row_block),
                pl.BlockSpec((tile_rows, HW_pad), row_block),
                # Tiny per-step weight slice; its DMA hides under the big streams.
                pl.BlockSpec((tile_rows, 1), row_block),
            ],
            out_specs=pl.BlockSpec((1, 1, HW_pad), lambda s, i: (s, 0, 0)),
        ),
        compiler_params=pltpu.CompilerParams(
            dimension_semantics=("parallel", "arbitrary"),
            vmem_limit_bytes=vmem_limit,
        ),
    )(pred, gt, tw)

    # Mean over all B*J*H*W elements, matching torch loss.mean().
    return jnp.sum(partials) / jnp.float32(BJ * HW)


def heatmap_loss_ref(output, target, target_weight, beta=1):
    B, J = output.shape[0], output.shape[1]
    pred = output.reshape(B, J, -1).astype(jnp.float32)
    gt = target.reshape(B, J, -1).astype(jnp.float32)
    diff = pred - gt
    loss = (jnp.abs(diff) ** beta) * target_weight.astype(jnp.float32) * diff**2
    return jnp.mean(loss)


if __name__ == "__main__":
    key = jax.random.PRNGKey(0)
    k1, k2, k3, k4, k5, k6 = jax.random.split(key, 6)

    # Case 1: aligned shapes (HW multiple of 128), beta=1.
    B, J, H, W = 2, 4, 16, 16
    output = jax.random.normal(k1, (B, J, H, W), dtype=jnp.float32)
    target = jax.random.normal(k2, (B, J, H, W), dtype=jnp.float32)
    target_weight = jax.random.uniform(k3, (B, J, 1), dtype=jnp.float32)

    loss = jax.block_until_ready(heatmap_loss(output, target, target_weight, beta=1))
    ref = jax.block_until_ready(heatmap_loss_ref(output, target, target_weight, beta=1))
    assert jnp.allclose(loss, ref, rtol=1e-5, atol=1e-6), (loss, ref)

    # Case 2: ragged shapes (H*W not a multiple of 128, odd B*J), beta=2.
    B, J, H, W = 3, 5, 17, 17
    output = jax.random.normal(k4, (B, J, H, W), dtype=jnp.float32)
    target = jax.random.normal(k5, (B, J, H, W), dtype=jnp.float32)
    target_weight = jax.random.uniform(k6, (B, J, 1), dtype=jnp.float32)

    loss2 = jax.block_until_ready(heatmap_loss(output, target, target_weight, beta=2))
    ref2 = jax.block_until_ready(heatmap_loss_ref(output, target, target_weight, beta=2))
    assert jnp.allclose(loss2, ref2, rtol=1e-5, atol=1e-6), (loss2, ref2)

    print("KERNEL_OK")
</pallas_src>

<mosaic_0001>
module attributes {stable_mosaic.version = 11 : i64} {
  func.func @_heatmap_loss_kernel(%arg0: i32, %arg1: i32, %arg2: memref<8x256xf32, #tpu.memory_space<vmem>>, %arg3: memref<8x256xf32, #tpu.memory_space<vmem>>, %arg4: memref<8x1xf32, #tpu.memory_space<vmem>>, %arg5: memref<1x1x256xf32, #tpu.memory_space<vmem>>) attributes {dimension_semantics = [#tpu.dimension_semantics<parallel>, #tpu.dimension_semantics<arbitrary>], iteration_bounds = array<i64: 1, 1>, scalar_prefetch = 0 : i64, scratch_operands = 0 : i64, tpu.core_type = #tpu.core_type<tc>, window_params = [{transform_indices = @transform_0, window_bounds = array<i64: 8, 256>}, {transform_indices = @transform_1, window_bounds = array<i64: 8, 256>}, {transform_indices = @transform_2, window_bounds = array<i64: 8, 1>}, {transform_indices = @transform_3, window_bounds = array<i64: 1, 1, 256>}]} {
    %c0_i32 = arith.constant 0 : i32
    %0 = arith.cmpi eq, %arg1, %c0_i32 : i32
    %1 = arith.extui %0 : i1 to i32
    %c0_i32_0 = arith.constant 0 : i32
    %2 = arith.cmpi ne, %1, %c0_i32_0 : i32
    scf.if %2 {
      %cst = arith.constant 0.000000e+00 : f32
      %15 = vector.broadcast %cst : f32 to vector<1x1x256xf32>
      %c0 = arith.constant 0 : index
      %c0_7 = arith.constant 0 : index
      %c0_8 = arith.constant 0 : index
      %16 = vector.load %arg5[%c0, %c0_7, %c0_8] : memref<1x1x256xf32, #tpu.memory_space<vmem>>, vector<1x1x256xf32>
      tpu.vector_store %arg5[%c0, %c0_7, %c0_8], %15 {strides = array<i32>} : memref<1x1x256xf32, #tpu.memory_space<vmem>>, vector<1x1x256xf32>,
    } else {
    }
    %c1_i32 = arith.constant 1 : i32
    %3 = arith.muli %arg0, %c1_i32 : i32
    %4 = arith.addi %3, %arg1 : i32
    %c8_i32 = arith.constant 8 : i32
    %5 = arith.muli %4, %c8_i32 : i32
    %c8_i32_1 = arith.constant 8 : i32
    %6 = arith.addi %5, %c8_i32_1 : i32
    %c8_i32_2 = arith.constant 8 : i32
    %7 = arith.cmpi sle, %6, %c8_i32_2 : i32
    %8 = arith.extui %7 : i1 to i32
    %c0_i32_3 = arith.constant 0 : i32
    %9 = arith.cmpi ne, %8, %c0_i32_3 : i32
    scf.if %9 {
      %c0 = arith.constant 0 : index
      %c0_7 = arith.constant 0 : index
      %15 = vector.load %arg2[%c0, %c0_7] : memref<8x256xf32, #tpu.memory_space<vmem>>, vector<8x256xf32>
      %c0_8 = arith.constant 0 : index
      %c0_9 = arith.constant 0 : index
      %16 = vector.load %arg3[%c0_8, %c0_9] : memref<8x256xf32, #tpu.memory_space<vmem>>, vector<8x256xf32>
      %c0_10 = arith.constant 0 : index
      %c0_11 = arith.constant 0 : index
      %17 = vector.load %arg4[%c0_10, %c0_11] : memref<8x1xf32, #tpu.memory_space<vmem>>, vector<8x1xf32>
      %18 = arith.subf %15, %16 : vector<8x256xf32>
      %19 = math.absf %18 : vector<8x256xf32>
      %20 = vector.broadcast %17 : vector<8x1xf32> to vector<8x256xf32>
      %21 = arith.mulf %19, %20 : vector<8x256xf32>
      %22 = arith.mulf %18, %18 : vector<8x256xf32>
      %23 = arith.mulf %21, %22 : vector<8x256xf32>
      %c0_12 = arith.constant 0 : index
      %c0_13 = arith.constant 0 : index
      %c0_14 = arith.constant 0 : index
      %24 = vector.load %arg5[%c0_12, %c0_13, %c0_14] : memref<1x1x256xf32, #tpu.memory_space<vmem>>, vector<1x1x256xf32>
      %cst = arith.constant dense<0.000000e+00> : vector<256xf32>
      %25 = vector.multi_reduction <add>, %23, %cst [0] : vector<8x256xf32> to vector<256xf32>
      %26 = vector.shape_cast %25 : vector<256xf32> to vector<1x256xf32>
      %27 = vector.shape_cast %26 : vector<1x256xf32> to vector<1x1x256xf32>
      %28 = arith.addf %24, %27 : vector<1x1x256xf32>
      %c0_15 = arith.constant 0 : index
      %c0_16 = arith.constant 0 : index
      %c0_17 = arith.constant 0 : index
      %29 = vector.load %arg5[%c0_15, %c0_16, %c0_17] : memref<1x1x256xf32, #tpu.memory_space<vmem>>, vector<1x1x256xf32>
      tpu.vector_store %arg5[%c0_15, %c0_16, %c0_17], %28 {strides = array<i32>} : memref<1x1x256xf32, #tpu.memory_space<vmem>>, vector<1x1x256xf32>,
    } else {
    }
    %c8_i32_4 = arith.constant 8 : i32
    %10 = arith.cmpi slt, %5, %c8_i32_4 : i32
    %c8_i32_5 = arith.constant 8 : i32
    %11 = arith.cmpi sgt, %6, %c8_i32_5 : i32
    %12 = arith.andi %10, %11 : i1
    %13 = arith.extui %12 : i1 to i32
    %c0_i32_6 = arith.constant 0 : i32
    %14 = arith.cmpi ne, %13, %c0_i32_6 : i32
    scf.if %14 {
      %c0 = arith.constant 0 : index
      %c0_7 = arith.constant 0 : index
      %15 = vector.load %arg2[%c0, %c0_7] : memref<8x256xf32, #tpu.memory_space<vmem>>, vector<8x256xf32>
      %c0_8 = arith.constant 0 : index
      %c0_9 = arith.constant 0 : index
      %16 = vector.load %arg3[%c0_8, %c0_9] : memref<8x256xf32, #tpu.memory_space<vmem>>, vector<8x256xf32>
      %c0_10 = arith.constant 0 : index
      %c0_11 = arith.constant 0 : index
      %17 = vector.load %arg4[%c0_10, %c0_11] : memref<8x1xf32, #tpu.memory_space<vmem>>, vector<8x1xf32>
      %18 = arith.subf %15, %16 : vector<8x256xf32>
      %19 = math.absf %18 : vector<8x256xf32>
      %20 = vector.broadcast %17 : vector<8x1xf32> to vector<8x256xf32>
      %21 = arith.mulf %19, %20 : vector<8x256xf32>
      %22 = arith.mulf %18, %18 : vector<8x256xf32>
      %23 = arith.mulf %21, %22 : vector<8x256xf32>
      %24 = tpu.iota {dimensions = array<i32: 0>} : vector<8x256xi32>
      %25 = vector.broadcast %5 : i32 to vector<8x256xi32>
      %26 = arith.addi %25, %24 : vector<8x256xi32>
      %c8_i32_12 = arith.constant 8 : i32
      %27 = vector.broadcast %c8_i32_12 : i32 to vector<8x256xi32>
      %28 = arith.cmpi slt, %26, %27 : vector<8x256xi32>
      %cst = arith.constant 0.000000e+00 : f32
      %29 = vector.broadcast %cst : f32 to vector<8x256xf32>
      %30 = arith.select %28, %23, %29 : vector<8x256xi1>, vector<8x256xf32>
      %c0_13 = arith.constant 0 : index
      %c0_14 = arith.constant 0 : index
      %c0_15 = arith.constant 0 : index
      %31 = vector.load %arg5[%c0_13, %c0_14, %c0_15] : memref<1x1x256xf32, #tpu.memory_space<vmem>>, vector<1x1x256xf32>
      %cst_16 = arith.constant dense<0.000000e+00> : vector<256xf32>
      %32 = vector.multi_reduction <add>, %30, %cst_16 [0] : vector<8x256xf32> to vector<256xf32>
      %33 = vector.shape_cast %32 : vector<256xf32> to vector<1x256xf32>
      %34 = vector.shape_cast %33 : vector<1x256xf32> to vector<1x1x256xf32>
      %35 = arith.addf %31, %34 : vector<1x1x256xf32>
      %c0_17 = arith.constant 0 : index
      %c0_18 = arith.constant 0 : index
      %c0_19 = arith.constant 0 : index
      %36 = vector.load %arg5[%c0_17, %c0_18, %c0_19] : memref<1x1x256xf32, #tpu.memory_space<vmem>>, vector<1x1x256xf32>
      tpu.vector_store %arg5[%c0_17, %c0_18, %c0_19], %35 {strides = array<i32>} : memref<1x1x256xf32, #tpu.memory_space<vmem>>, vector<1x1x256xf32>,
    } else {
    }
    return
  }
  func.func @transform_0(%arg0: i32, %arg1: i32) -> (i32, i32) {
    %c1_i32 = arith.constant 1 : i32
    %0 = arith.muli %arg0, %c1_i32 : i32
    %1 = arith.addi %0, %arg1 : i32
    %c0_i32 = arith.constant 0 : i32
    %2 = arith.minsi %1, %c0_i32 : i32
    %c0_i32_0 = arith.constant 0 : i32
    %c0_i32_1 = arith.constant 0 : i32
    return %2, %c0_i32_0 : i32, i32
  }
  func.func @transform_1(%arg0: i32, %arg1: i32) -> (i32, i32) {
    %c1_i32 = arith.constant 1 : i32
    %0 = arith.muli %arg0, %c1_i32 : i32
    %1 = arith.addi %0, %arg1 : i32
    %c0_i32 = arith.constant 0 : i32
    %2 = arith.minsi %1, %c0_i32 : i32
    %c0_i32_0 = arith.constant 0 : i32
    %c0_i32_1 = arith.constant 0 : i32
    return %2, %c0_i32_0 : i32, i32
  }
  func.func @transform_2(%arg0: i32, %arg1: i32) -> (i32, i32) {
    %c1_i32 = arith.constant 1 : i32
    %0 = arith.muli %arg0, %c1_i32 : i32
    %1 = arith.addi %0, %arg1 : i32
    %c0_i32 = arith.constant 0 : i32
    %2 = arith.minsi %1, %c0_i32 : i32
    %c0_i32_0 = arith.constant 0 : i32
    %c0_i32_1 = arith.constant 0 : i32
    return %2, %c0_i32_0 : i32, i32
  }
  func.func @transform_3(%arg0: i32, %arg1: i32) -> (i32, i32, i32) {
    %c0_i32 = arith.constant 0 : i32
    %c0_i32_0 = arith.constant 0 : i32
    %c0_i32_1 = arith.constant 0 : i32
    return %arg0, %c0_i32, %c0_i32_0 : i32, i32, i32
  }
}

</mosaic_0001>

<bundles_post_ra>
// kernel: tpu_custom_call.1
= control target key start
LH: loop header
LB: loop body
LE: loop exit
PB: predicated region body
PF: predicated region fallthrough
CT: control target
= control target key end

     0   :  { %8 = vsyncpa [#allocation3], 0  ;;  %s372_s0 = inlined_call_operand.hbm [shape: f32[8,256], index: 0, kind: input, shape index: {}]   ;;  %s373_s1 = inlined_call_operand.hbm [shape: f32[8,256], index: 1, kind: input, shape index: {}]   ;;  %s374_s2 = inlined_call_operand.vmem [shape: f32[8,1], index: 2, kind: input, shape index: {}]   ;;  %s375_s3 = inlined_call_operand.hbm [shape: f32[1,1,256], index: 3, kind: output, shape index: {}]  }
   0x1   :  { %9 = vsyncpa [#allocation6], 0 }
   0x2   :  { %10 = vsyncpa [#allocation4], 0  ;;  %s326_s12 = smov [#allocation2]   ;;  %s327_s14 = smov [#allocation5]  }
   0x3   :  { %s23_s13 = sshll.u32 %s326_s12, 4  ;;  %s39_s15 = sshll.u32 %s327_s14, 4  ;;  %s24_s13 = int_to_ptr.vmem [resolvable:$true] %s23_s13  ;;  %s40_s15 = int_to_ptr.vmem [resolvable:$true] %s39_s15 }
   0x4   :  { %s268_s16 = scalar_lea.vmem %s24_s13, 256  ;;  %p273_p1 = scmp.lt.s32.totalorder %s24_s13, %s24_s13 }
   0x5   :  { %p269_p0 = scmp.ne.s32.totalorder %s24_s13, %s268_s16  ;;  %p274_p2 = scmp.lt.s32.totalorder %s268_s16, %s268_s16 }
   0x7   :  { %p275_p3 = por %p274_p2, %p273_p1 }
   0x9   :  { %p276_p4 = pnand %p275_p3, %p269_p0 }
   0xb   :  { %279 = shalt.err (!%p276_p4)
}
   0xc   :  { %26 = dma.hbm_to_vmem [thread:$0]  %s372_s0, 256, %s24_s13, [#allocation3]  }
   0xd   :  { %s288_s19 = scalar_lea.vmem %s40_s15, 256  ;;  %p293_p6 = scmp.lt.s32.totalorder %s40_s15, %s40_s15 }
   0xe   :  { %p289_p5 = scmp.ne.s32.totalorder %s40_s15, %s288_s19  ;;  %p294_p7 = scmp.lt.s32.totalorder %s288_s19, %s288_s19 }
  0x10   :  { %p295_p8 = por %p294_p7, %p293_p6 }
  0x12   :  { %p296_p9 = pnand %p295_p8, %p289_p5 }
  0x14   :  { %299 = shalt.err (!%p296_p9)
}
  0x15   :  { %42 = dma.hbm_to_vmem [thread:$0]  %s373_s1, 256, %s40_s15, [#allocation6]  }
  0x16   :  { %320 = dma.done.wait [#allocation3], 256  }
  0x17   :  { %321 = vsyncadd [#allocation3], 4294967040 }
  0x18   :  { %322 = dma.done.wait [#allocation6], 256  }
  0x19   :  { %323 = vsyncadd [#allocation6], 4294967040  ;;  %v328_v0 = vmov 0   ;;  %v104_v1 = vld [vmem:[%s374_s2] sm:$0xff]  ;;  %v88_v2 = vlaneseq  ;;  %v329_v4 = vmov 0.0   ;;  %v101_v6 = vld [vmem:[#allocation2 + $0x8] sm:$0xff] }
  0x1a   :  { %259 = vset.pattern.permute.xlu0 %v328_v0  ;;  %v100_v5 = vld [vmem:[#allocation2] sm:$0xff]  ;;  %v102_v7 = vld [vmem:[#allocation5] sm:$0xff]  ;;  %v103_v8 = vld [vmem:[#allocation5 + $0x8] sm:$0xff]  ;;  %v330_v24 = vmov 1966171168   ;;  %s331_s0 = smov [#allocation7]  }
  0x1b   :  { %111 = vperm.xlu0 %259, %v104_v1   ;;  %vm361_vm0 = vcmp.lt.s32.totalorder %v88_v2, 256  ;;  %v105_v9 = vsub.f32 %v100_v5, %v102_v7  ;;  %v106_v10 = vsub.f32 %v101_v6, %v103_v8  ;;  %v137_v25 = vunpack.c.l.s4 %v330_v24  ;;  %s233_s1 = sshll.u32 %s331_s0, 4  ;;  %s234_s1 = int_to_ptr.vmem [resolvable:$true] %s233_s1 }
  0x1c   :  { %92 = vst.msk [vmem:[#allocation7] sm:$0x3] %vm361_vm0, %v329_v4  ;;  %v140_v31 = vshrl.u32 %v88_v2, 7  ;;  %s300_s2 = scalar_lea.vmem %s234_s1, 32  ;;  %p305_p11 = scmp.lt.s32.totalorder %s234_s1, %s234_s1 }
  0x1d   :  { %v107_v11 = vand.u32 2147483647, %v105_v9  ;;  %v108_v12 = vand.u32 2147483647, %v106_v10  ;;  %v116_v13 = vmul.f32 %v105_v9, %v105_v9  ;;  %v117_v14 = vmul.f32 %v106_v10, %v106_v10  ;;  %p301_p10 = scmp.ne.s32.totalorder %s234_s1, %s300_s2  ;;  %p306_p12 = scmp.lt.s32.totalorder %s300_s2, %s300_s2 }
  0x1e   :  { %v138_v30 = vunpack.c.0.s8 %v137_v25 }
  0x1f   :  { %p307_p13 = por %p306_p12, %p305_p11 }
  0x20   :  { %v141_v36 = vsub.s32 %v138_v30, %v140_v31 }
  0x21   :  { %p308_p0 = pnand %p307_p13, %p301_p10 }
  0x23   :  { %v120_v39 = vld [vmem:[#allocation7] sm:$0x3] }
  0x96   :  { %v112_v15 = vpop.permute.xlu0 %111 }
  0x97   :  { %v114_v16 = vmul.f32 %v112_v15, %v107_v11  ;;  %v115_v17 = vmul.f32 %v112_v15, %v108_v12 }
  0x99   :  { %v118_v18 = vmul.f32 %v116_v13, %v114_v16  ;;  %v119_v19 = vmul.f32 %v117_v14, %v115_v17 }
  0x9b   :  { %v121_v20 = vrot.slane %v118_v18, 4  ;;  %v127_v21 = vrot.slane %v119_v19, 4 }
  0x9d   :  { %v122_v22 = vadd.f32 %v121_v20, %v118_v18  ;;  %v128_v23 = vadd.f32 %v127_v21, %v119_v19 }
  0x9f   :  { %v123_v26 = vrot.slane %v122_v22, 2  ;;  %v129_v27 = vrot.slane %v128_v23, 2 }
  0xa1   :  { %v124_v28 = vadd.f32 %v123_v26, %v122_v22  ;;  %v130_v29 = vadd.f32 %v129_v27, %v128_v23 }
  0xa3   :  { %v125_v32 = vrot.slane %v124_v28, 1  ;;  %v131_v33 = vrot.slane %v130_v29, 1 }
  0xa5   :  { %v126_v34 = vadd.f32 %v125_v32, %v124_v28  ;;  %v132_v35 = vadd.f32 %v131_v33, %v130_v29 }
  0xa7   :  { %v135_v37 = vcombine.low %v126_v34, %v132_v35 }
  0xa9   :  { %v142_v38 = vrot.slane %v135_v37, %v141_v36 }
  0xab   :  { %v149_v40 = vrot.slane %v142_v38, %v141_v36 }
  0xad   :  { %v151_v41 = vadd.f32 %v149_v40, %v120_v39 }
  0xaf   :  { %156 = vst.msk [vmem:[#allocation7] sm:$0x3] %vm361_vm0, %v151_v41 }
  0xb0   :  { %311 = shalt.err (!%p308_p0)
}
  0xb1   :  { %236 = dma.vmem_to_hbm [thread:$0]  %s234_s1, 32, %s375_s3, [#allocation4]  }
  0xb2   :  { %324 = dma.done.wait [#allocation4], 32  }
  0xb3   :  { %325 = vsyncadd [#allocation4], 4294967264 }
  0xb4   :  { %240 = vsyncpa [#allocation3], 1 }
  0xb5   :  { %241 = vsyncpa [#allocation6], 1 }
  0xb6   :  { %242 = vsyncpa [#allocation4], 1 }

</bundles_post_ra>
